<compile_context>
chip_gen: v6e
topology: v6e:2x2x1
jax: 0.10.0
libtpu: 0.0.40
codegen_flags: <defaults>
</compile_context>

<pallas_src>
import functools
from typing import NamedTuple

import jax
import jax.numpy as jnp
from jax.experimental import pallas as pl
from jax.experimental.pallas import tpu as pltpu

LANE = 128
FUSED_MAX_NPAD = 2048              # single-call fused path threshold
XW_RESIDENT_MAX_BYTES = 12 * 1024 * 1024


def _round_up(x, m):
    return (x + m - 1) // m * m


@functools.lru_cache(maxsize=1)
def _vmem_limit():
    """Generation-aware VMEM limit: ~3/4 of physical, capped at 112 MiB."""
    try:
        info = pltpu.get_tpu_info()
        cap = int(getattr(info, "vmem_capacity_bytes", 0) or 0)
        if cap > 0:
            return min((cap * 3) // 4, 112 * 1024 * 1024)
    except Exception:
        pass
    return 48 * 1024 * 1024


class TilePlan(NamedTuple):
    fused: bool
    n_pad: int
    tm: int
    tk: int


def plan_tiles(num_nodes, *, tm=512, tk=2048, force_tiled=False):
    """Pick padded size + tiles; guarantees tm | n_pad and tk | n_pad."""
    n128 = _round_up(max(num_nodes, 1), LANE)
    if (not force_tiled) and n128 <= FUSED_MAX_NPAD:
        return TilePlan(True, n128, n128, n128)
    tm = max(LANE, min(_round_up(tm, LANE), n128))
    n_pad = _round_up(num_nodes, tm)
    q = n_pad // tm
    d = 1
    for cand in range(max(1, min(tk // tm, q)), 0, -1):
        if q % cand == 0:
            d = cand
            break
    tk = d * tm
    assert n_pad % tm == 0 and n_pad % tk == 0
    return TilePlan(False, n_pad, tm, tk)


# ---------------------------------------------------------------------------
# Graph preprocessing (plain JAX, hoisted out of the forward pass)
# ---------------------------------------------------------------------------
def build_adjacency(edge_index, num_nodes):
    """Unnormalized (A + I) as dense f32 of small ints, plus D^{-1/2}."""
    src = edge_index[0]
    dst = edge_index[1]
    a = jnp.zeros((num_nodes, num_nodes), jnp.float32)
    # PyG message passing: messages flow source -> target, so row = dst, col = src.
    a = a.at[dst, src].add(1.0)
    a = a + jnp.eye(num_nodes, dtype=jnp.float32)
    deg = a.sum(axis=1)
    dis = jnp.where(deg > 0, jax.lax.rsqrt(deg), 0.0)
    return a, dis


def prepare_graph(edge_index, num_nodes, n_pad):
    """Padded int8 (A+I) and padded D^{-1/2}; built once per (static) graph."""
    a01, dis = build_adjacency(edge_index, num_nodes)
    a01_p = jnp.zeros((n_pad, n_pad), jnp.int8).at[:num_nodes, :num_nodes].set(
        a01.astype(jnp.int8))
    dis_p = jnp.zeros((n_pad, 1), jnp.float32).at[:num_nodes, 0].set(dis)
    return a01_p, dis_p


def _masked_log_softmax(z, valid_cols):
    col = jax.lax.broadcasted_iota(jnp.int32, z.shape, 1)
    valid = col < valid_cols
    z = jnp.where(valid, z, -jnp.inf)
    m = jnp.max(z, axis=-1, keepdims=True)
    s = z - m
    lse = jnp.log(jnp.sum(jnp.exp(s), axis=-1, keepdims=True))
    return jnp.where(valid, s - lse, 0.0)


# ---------------------------------------------------------------------------
# Kernel A: fully fused small-graph forward (single pallas_call, no reduction grid)
# ---------------------------------------------------------------------------
def fused_gcn_kernel(a_ref, dis_ref, x_ref, w1_ref, b1_ref, w2_ref, b2_ref,
                     o_ref, *, valid_cols):
    dis = dis_ref[...]                                  # (N, 1) f32, exact
    a = a_ref[...].astype(jnp.bfloat16)                 # 0/1 ints: exact in bf16

    # conv1: relu(D^-1/2 (A+I) D^-1/2 X W1 + b1)
    xw1 = jnp.dot(x_ref[...], w1_ref[...], preferred_element_type=jnp.float32) * dis
    p1 = jnp.dot(a, xw1.astype(jnp.bfloat16), preferred_element_type=jnp.float32)
    h = jnp.maximum(p1 * dis + b1_ref[...], 0.0)
    # dropout: identity in eval mode.

    # conv2 + log_softmax
    hw2 = jnp.dot(h.astype(jnp.bfloat16), w2_ref[...],
                  preferred_element_type=jnp.float32) * dis
    p2 = jnp.dot(a, hw2.astype(jnp.bfloat16), preferred_element_type=jnp.float32)
    z = p2 * dis + b2_ref[...]
    o_ref[...] = _masked_log_softmax(z, valid_cols).astype(o_ref.dtype)


def _fused_forward(a01, dis, x, w1, b1, w2, b2, n_classes):
    n_pad = a01.shape[0]
    f_pad = x.shape[1]
    h_pad = w1.shape[1]
    c_pad = w2.shape[1]
    kern = functools.partial(fused_gcn_kernel, valid_cols=n_classes)
    return pl.pallas_call(
        kern,
        out_shape=jax.ShapeDtypeStruct((n_pad, c_pad), jnp.float32),
        grid_spec=pltpu.PrefetchScalarGridSpec(
            num_scalar_prefetch=0,
            grid=(1,),
            in_specs=[
                pl.BlockSpec((n_pad, n_pad), lambda i: (0, 0)),
                pl.BlockSpec((n_pad, 1), lambda i: (0, 0)),
                pl.BlockSpec((n_pad, f_pad), lambda i: (0, 0)),
                pl.BlockSpec((f_pad, h_pad), lambda i: (0, 0)),
                pl.BlockSpec((1, h_pad), lambda i: (0, 0)),
                pl.BlockSpec((h_pad, c_pad), lambda i: (0, 0)),
                pl.BlockSpec((1, c_pad), lambda i: (0, 0)),
            ],
            out_specs=pl.BlockSpec((n_pad, c_pad), lambda i: (0, 0)),
        ),
        compiler_params=pltpu.CompilerParams(
            dimension_semantics=("arbitrary",),
            vmem_limit_bytes=_vmem_limit(),
        ),
    )(a01, dis, x, w1, b1, w2, b2)


# ---------------------------------------------------------------------------
# Kernel B1: row-tiled, pre-scaled feature projection  O = D^-1/2 (X @ W)
# ---------------------------------------------------------------------------
def project_kernel(x_ref, w_ref, dis_ref, o_ref):
    xw = jnp.dot(x_ref[...], w_ref[...], preferred_element_type=jnp.float32)
    o_ref[...] = (xw * dis_ref[...]).astype(o_ref.dtype)


def _project(x, w, dis, tm):
    n, f_in = x.shape
    hp = w.shape[1]
    return pl.pallas_call(
        project_kernel,
        out_shape=jax.ShapeDtypeStruct((n, hp), jnp.bfloat16),
        grid_spec=pltpu.PrefetchScalarGridSpec(
            num_scalar_prefetch=0,
            grid=(n // tm,),
            in_specs=[
                pl.BlockSpec((tm, f_in), lambda i: (i, 0)),
                pl.BlockSpec((f_in, hp), lambda i: (0, 0)),
                pl.BlockSpec((tm, 1), lambda i: (i, 0)),
            ],
            out_specs=pl.BlockSpec((tm, hp), lambda i: (i, 0)),
        ),
        compiler_params=pltpu.CompilerParams(
            dimension_semantics=("parallel",),
            vmem_limit_bytes=_vmem_limit(),
        ),
    )(x, w, dis)


# ---------------------------------------------------------------------------
# Kernel B2: tiled propagation  O = act(D^-1/2 ((A+I) @ XWs) + b)
#   grid = (row tiles [parallel], K reduction tiles [arbitrary])
#   A+I streamed as int8 (half the HBM bytes of bf16, exact), cast in-kernel.
#   XWs held VMEM-resident (sliced with pl.ds) when it fits the budget.
# ---------------------------------------------------------------------------
def propagate_kernel(a_ref, xw_ref, dis_ref, b_ref, o_ref, acc_ref, *,
                     activation, valid_cols, tk, xw_resident):
    k = pl.program_id(1)

    @pl.when(k == 0)
    def _():
        acc_ref[...] = jnp.zeros_like(acc_ref)

    a_blk = a_ref[...].astype(jnp.bfloat16)
    if xw_resident:
        start = pl.multiple_of(k * tk, tk)
        xw_blk = xw_ref[pl.ds(start, tk), :]
    else:
        xw_blk = xw_ref[...]
    acc_ref[...] += jnp.dot(a_blk, xw_blk, preferred_element_type=jnp.float32)

    @pl.when(k == pl.num_programs(1) - 1)
    def _():
        z = acc_ref[...] * dis_ref[...] + b_ref[...]
        if activation == "relu":
            o_ref[...] = jnp.maximum(z, 0.0).astype(o_ref.dtype)
        else:
            o_ref[...] = _masked_log_softmax(z, valid_cols).astype(o_ref.dtype)


def _propagate(a01, xw, dis, b, activation, valid_cols, tm, tk, out_dtype):
    n = a01.shape[0]
    hp = xw.shape[1]
    xw_resident = int(xw.size) * xw.dtype.itemsize <= XW_RESIDENT_MAX_BYTES
    kern = functools.partial(propagate_kernel, activation=activation,
                             valid_cols=valid_cols, tk=tk,
                             xw_resident=xw_resident)
    if xw_resident:
        xw_spec = pl.BlockSpec((n, hp), lambda i, k: (0, 0))
    else:
        xw_spec = pl.BlockSpec((tk, hp), lambda i, k: (k, 0))
    return pl.pallas_call(
        kern,
        out_shape=jax.ShapeDtypeStruct((n, hp), out_dtype),
        grid_spec=pltpu.PrefetchScalarGridSpec(
            num_scalar_prefetch=0,
            grid=(n // tm, n // tk),
            in_specs=[
                pl.BlockSpec((tm, tk), lambda i, k: (i, k)),
                xw_spec,
                pl.BlockSpec((tm, 1), lambda i, k: (i, 0)),
                pl.BlockSpec((1, hp), lambda i, k: (0, 0)),
            ],
            out_specs=pl.BlockSpec((tm, hp), lambda i, k: (i, 0)),
            scratch_shapes=[pltpu.VMEM((tm, hp), jnp.float32)],
        ),
        compiler_params=pltpu.CompilerParams(
            dimension_semantics=("parallel", "arbitrary"),
            vmem_limit_bytes=_vmem_limit(),
        ),
    )(a01, xw, dis, b)


# ---------------------------------------------------------------------------
# Full forward pass wrapper
# ---------------------------------------------------------------------------
def gcn_forward(a01_p, dis_p, x, w1, b1, w2, b2, *, num_nodes, plan):
    n_pad = plan.n_pad
    assert a01_p.shape == (n_pad, n_pad) and dis_p.shape == (n_pad, 1)

    f_in = x.shape[1]
    hidden = w1.shape[1]
    n_classes = w2.shape[1]
    f_pad = _round_up(f_in, LANE)
    h_pad = _round_up(hidden, LANE)
    c_pad = _round_up(n_classes, LANE)

    # Zero-pad (inert rows/lanes) + bf16 cast for MXU-native matmuls.
    x_p = jnp.zeros((n_pad, f_pad), jnp.bfloat16).at[:num_nodes, :f_in].set(
        x.astype(jnp.bfloat16))
    w1_p = jnp.zeros((f_pad, h_pad), jnp.bfloat16).at[:f_in, :hidden].set(
        w1.astype(jnp.bfloat16))
    b1_p = jnp.zeros((1, h_pad), jnp.float32).at[:, :hidden].set(
        b1.reshape(1, -1).astype(jnp.float32))
    w2_p = jnp.zeros((h_pad, c_pad), jnp.bfloat16).at[:hidden, :n_classes].set(
        w2.astype(jnp.bfloat16))
    b2_p = jnp.zeros((1, c_pad), jnp.float32).at[:, :n_classes].set(
        b2.reshape(1, -1).astype(jnp.float32))

    if plan.fused:
        z = _fused_forward(a01_p, dis_p, x_p, w1_p, b1_p, w2_p, b2_p, n_classes)
    else:
        tm, tk = plan.tm, plan.tk
        # conv1: relu(D^-1/2 (A+I) D^-1/2 (X W1) + b1)
        xw1 = _project(x_p, w1_p, dis_p, tm)                        # [Np, Hp] bf16
        h = _propagate(a01_p, xw1, dis_p, b1_p, "relu", hidden, tm, tk,
                       jnp.bfloat16)
        # dropout: identity in eval mode.
        # TODO(synk): fuse (h @ W2) into the propagate-1 finalize (saves one
        #             launch + the HBM round-trip of h).
        hw2 = _project(h, w2_p, dis_p, tm)                          # [Np, Cp] bf16
        z = _propagate(a01_p, hw2, dis_p, b2_p, "log_softmax", n_classes,
                       tm, tk, jnp.float32)

    return z[:num_nodes, :n_classes]


# ---------------------------------------------------------------------------
# Glue (plain JAX): init + reference
# ---------------------------------------------------------------------------
def glorot(key, shape):
    fan_in, fan_out = shape
    limit = jnp.sqrt(6.0 / (fan_in + fan_out))
    return jax.random.uniform(key, shape, jnp.float32, -limit, limit)


def gcn_reference(a_hat, x, w1, b1, w2, b2):
    h = jnp.maximum(a_hat @ (x @ w1) + b1, 0.0)
    z = a_hat @ (h @ w2) + b2
    return jax.nn.log_softmax(z, axis=1)


if __name__ == "__main__":
    # Small synthetic setup consistent with the module:
    #   num_features = len(data.x[0]) -> 32, hidden = 16, classes = 2
    N_FEATURES = 32
    HIDDEN = 16
    N_CLASSES = 2

    key = jax.random.PRNGKey(0)
    k_x1, k_x2, k_w1, k_w2 = jax.random.split(key, 4)

    # GCNConv-style init: Glorot weights, zero bias.
    w1 = glorot(k_w1, (N_FEATURES, HIDDEN))
    b1 = jnp.zeros((1, HIDDEN), jnp.float32)
    w2 = glorot(k_w2, (HIDDEN, N_CLASSES))
    b2 = jnp.zeros((1, N_CLASSES), jnp.float32)

    def ring_edges(n):
        s = jnp.arange(n, dtype=jnp.int32)
        d = (s + 1) % n
        return jnp.stack([jnp.concatenate([s, d]), jnp.concatenate([d, s])], 0)

    def run_case(n_nodes, x_key, *, tm, tk, force_tiled):
        x = jax.random.normal(x_key, (n_nodes, N_FEATURES), jnp.float32)
        edge_index = ring_edges(n_nodes)
        plan = plan_tiles(n_nodes, tm=tm, tk=tk, force_tiled=force_tiled)
        a01_p, dis_p = prepare_graph(edge_index, n_nodes, plan.n_pad)   # per-graph
        out = gcn_forward(a01_p, dis_p, x, w1, b1, w2, b2,
                          num_nodes=n_nodes, plan=plan)
        out = jax.block_until_ready(out)

        # f32 reference from the same graph construction.
        a01, dis = build_adjacency(edge_index, n_nodes)
        a_hat = dis[:, None] * a01 * dis[None, :]
        ref = gcn_reference(a_hat, x, w1, b1, w2, b2)

        assert out.shape == (n_nodes, N_CLASSES)
        row_sums = jnp.exp(out).sum(axis=1)
        assert bool(jnp.all(jnp.abs(row_sums - 1.0) < 1e-4))
        # Loose tolerance: projection/propagation operands are bf16 (f32 acc).
        assert bool(jnp.all(jnp.abs(out - ref) < 5e-2))

    # 1) Fused single-call path (the regime the shipped module runs in).
    run_case(8, k_x1, tm=512, tk=2048, force_tiled=False)
    # 2) Tiled multi-step path, forced onto small tiles so the K-reduction
    #    accumulator and the resident-XW pl.ds slicing are exercised.
    run_case(300, k_x2, tm=128, tk=128, force_tiled=True)

    print("KERNEL_OK")
</pallas_src>

<mosaic_0001>
module attributes {stable_mosaic.version = 11 : i64} {
  func.func @fused_gcn_kernel(%arg0: i32, %arg1: memref<128x128xi8, #tpu.memory_space<vmem>>, %arg2: memref<128x1xf32, #tpu.memory_space<vmem>>, %arg3: memref<128x128xbf16, #tpu.memory_space<vmem>>, %arg4: memref<128x128xbf16, #tpu.memory_space<vmem>>, %arg5: memref<1x128xf32, #tpu.memory_space<vmem>>, %arg6: memref<128x128xbf16, #tpu.memory_space<vmem>>, %arg7: memref<1x128xf32, #tpu.memory_space<vmem>>, %arg8: memref<128x128xf32, #tpu.memory_space<vmem>>) attributes {dimension_semantics = [#tpu.dimension_semantics<arbitrary>], iteration_bounds = array<i64: 1>, scalar_prefetch = 0 : i64, scratch_operands = 0 : i64, tpu.core_type = #tpu.core_type<tc>, window_params = [{pipeline_mode = #tpu.pipeline_mode<synchronous>, transform_indices = @transform_0, window_bounds = array<i64: 128, 128>}, {pipeline_mode = #tpu.pipeline_mode<synchronous>, transform_indices = @transform_1, window_bounds = array<i64: 128, 1>}, {pipeline_mode = #tpu.pipeline_mode<synchronous>, transform_indices = @transform_2, window_bounds = array<i64: 128, 128>}, {pipeline_mode = #tpu.pipeline_mode<synchronous>, transform_indices = @transform_3, window_bounds = array<i64: 128, 128>}, {pipeline_mode = #tpu.pipeline_mode<synchronous>, transform_indices = @transform_4, window_bounds = array<i64: 1, 128>}, {pipeline_mode = #tpu.pipeline_mode<synchronous>, transform_indices = @transform_5, window_bounds = array<i64: 128, 128>}, {pipeline_mode = #tpu.pipeline_mode<synchronous>, transform_indices = @transform_6, window_bounds = array<i64: 1, 128>}, {pipeline_mode = #tpu.pipeline_mode<synchronous>, transform_indices = @transform_7, window_bounds = array<i64: 128, 128>}]} {
    %c0 = arith.constant 0 : index
    %c0_0 = arith.constant 0 : index
    %0 = vector.load %arg2[%c0, %c0_0] : memref<128x1xf32, #tpu.memory_space<vmem>>, vector<128x1xf32>
    %c0_1 = arith.constant 0 : index
    %c0_2 = arith.constant 0 : index
    %1 = vector.load %arg1[%c0_1, %c0_2] : memref<128x128xi8, #tpu.memory_space<vmem>>, vector<128x128xi8>
    %2 = arith.sitofp %1 : vector<128x128xi8> to vector<128x128xbf16>
    %c0_3 = arith.constant 0 : index
    %c0_4 = arith.constant 0 : index
    %3 = vector.load %arg3[%c0_3, %c0_4] : memref<128x128xbf16, #tpu.memory_space<vmem>>, vector<128x128xbf16>
    %c0_5 = arith.constant 0 : index
    %c0_6 = arith.constant 0 : index
    %4 = vector.load %arg4[%c0_5, %c0_6] : memref<128x128xbf16, #tpu.memory_space<vmem>>, vector<128x128xbf16>
    %cst = arith.constant dense<0.000000e+00> : vector<128x128xf32>
    %5 = tpu.matmul %3, %4, %cst {dimension_numbers = #tpu.dot_dimension_numbers<[1], [0], [0], [1], [0, 0, 1, 1], [], []>} : vector<128x128xbf16>, vector<128x128xbf16>, vector<128x128xf32> -> vector<128x128xf32>
    %6 = vector.broadcast %0 : vector<128x1xf32> to vector<128x128xf32>
    %7 = arith.mulf %5, %6 : vector<128x128xf32>
    %8 = arith.truncf %7 : vector<128x128xf32> to vector<128x128xbf16>
    %cst_7 = arith.constant dense<0.000000e+00> : vector<128x128xf32>
    %9 = tpu.matmul %2, %8, %cst_7 {dimension_numbers = #tpu.dot_dimension_numbers<[1], [0], [0], [1], [0, 0, 1, 1], [], []>} : vector<128x128xbf16>, vector<128x128xbf16>, vector<128x128xf32> -> vector<128x128xf32>
    %10 = vector.broadcast %0 : vector<128x1xf32> to vector<128x128xf32>
    %11 = arith.mulf %9, %10 : vector<128x128xf32>
    %c0_8 = arith.constant 0 : index
    %c0_9 = arith.constant 0 : index
    %12 = vector.load %arg5[%c0_8, %c0_9] : memref<1x128xf32, #tpu.memory_space<vmem>>, vector<1x128xf32>
    %13 = vector.broadcast %12 : vector<1x128xf32> to vector<128x128xf32>
    %14 = arith.addf %11, %13 : vector<128x128xf32>
    %cst_10 = arith.constant 0.000000e+00 : f32
    %15 = vector.broadcast %cst_10 : f32 to vector<128x128xf32>
    %16 = arith.maximumf %14, %15 : vector<128x128xf32>
    %17 = arith.truncf %16 : vector<128x128xf32> to vector<128x128xbf16>
    %c0_11 = arith.constant 0 : index
    %c0_12 = arith.constant 0 : index
    %18 = vector.load %arg6[%c0_11, %c0_12] : memref<128x128xbf16, #tpu.memory_space<vmem>>, vector<128x128xbf16>
    %cst_13 = arith.constant dense<0.000000e+00> : vector<128x128xf32>
    %19 = tpu.matmul %17, %18, %cst_13 {dimension_numbers = #tpu.dot_dimension_numbers<[1], [0], [0], [1], [0, 0, 1, 1], [], []>} : vector<128x128xbf16>, vector<128x128xbf16>, vector<128x128xf32> -> vector<128x128xf32>
    %20 = vector.broadcast %0 : vector<128x1xf32> to vector<128x128xf32>
    %21 = arith.mulf %19, %20 : vector<128x128xf32>
    %22 = arith.truncf %21 : vector<128x128xf32> to vector<128x128xbf16>
    %cst_14 = arith.constant dense<0.000000e+00> : vector<128x128xf32>
    %23 = tpu.matmul %2, %22, %cst_14 {dimension_numbers = #tpu.dot_dimension_numbers<[1], [0], [0], [1], [0, 0, 1, 1], [], []>} : vector<128x128xbf16>, vector<128x128xbf16>, vector<128x128xf32> -> vector<128x128xf32>
    %24 = vector.broadcast %0 : vector<128x1xf32> to vector<128x128xf32>
    %25 = arith.mulf %23, %24 : vector<128x128xf32>
    %c0_15 = arith.constant 0 : index
    %c0_16 = arith.constant 0 : index
    %26 = vector.load %arg7[%c0_15, %c0_16] : memref<1x128xf32, #tpu.memory_space<vmem>>, vector<1x128xf32>
    %27 = vector.broadcast %26 : vector<1x128xf32> to vector<128x128xf32>
    %28 = arith.addf %25, %27 : vector<128x128xf32>
    %29 = tpu.iota {dimensions = array<i32: 1>} : vector<128x128xi32>
    %c2_i32 = arith.constant 2 : i32
    %30 = vector.broadcast %c2_i32 : i32 to vector<128x128xi32>
    %31 = arith.cmpi slt, %29, %30 : vector<128x128xi32>
    %cst_17 = arith.constant 0xFF800000 : f32
    %32 = vector.broadcast %cst_17 : f32 to vector<128x128xf32>
    %33 = arith.select %31, %28, %32 : vector<128x128xi1>, vector<128x128xf32>
    %cst_18 = arith.constant dense<0xFF800000> : vector<128xf32>
    %34 = vector.multi_reduction <maximumf>, %33, %cst_18 [1] : vector<128x128xf32> to vector<128xf32>
    %35 = vector.shape_cast %34 : vector<128xf32> to vector<128x1xf32>
    %36 = vector.broadcast %35 : vector<128x1xf32> to vector<128x128xf32>
    %37 = arith.subf %33, %36 : vector<128x128xf32>
    %38 = math.exp %37 : vector<128x128xf32>
    %cst_19 = arith.constant dense<0.000000e+00> : vector<128xf32>
    %39 = vector.multi_reduction <add>, %38, %cst_19 [1] : vector<128x128xf32> to vector<128xf32>
    %40 = vector.shape_cast %39 : vector<128xf32> to vector<128x1xf32>
    %41 = math.log %40 : vector<128x1xf32>
    %42 = vector.broadcast %41 : vector<128x1xf32> to vector<128x128xf32>
    %43 = arith.subf %37, %42 : vector<128x128xf32>
    %cst_20 = arith.constant 0.000000e+00 : f32
    %44 = vector.broadcast %cst_20 : f32 to vector<128x128xf32>
    %45 = arith.select %31, %43, %44 : vector<128x128xi1>, vector<128x128xf32>
    %c0_21 = arith.constant 0 : index
    %c0_22 = arith.constant 0 : index
    %46 = vector.load %arg8[%c0_21, %c0_22] : memref<128x128xf32, #tpu.memory_space<vmem>>, vector<128x128xf32>
    tpu.vector_store %arg8[%c0_21, %c0_22], %45 {strides = array<i32>} : memref<128x128xf32, #tpu.memory_space<vmem>>, vector<128x128xf32>,
    return
  }
  func.func @transform_0(%arg0: i32) -> (i32, i32) {
    %c0_i32 = arith.constant 0 : i32
    %c0_i32_0 = arith.constant 0 : i32
    %c0_i32_1 = arith.constant 0 : i32
    return %c0_i32, %c0_i32_0 : i32, i32
  }
  func.func @transform_1(%arg0: i32) -> (i32, i32) {
    %c0_i32 = arith.constant 0 : i32
    %c0_i32_0 = arith.constant 0 : i32
    %c0_i32_1 = arith.constant 0 : i32
    return %c0_i32, %c0_i32_0 : i32, i32
  }
  func.func @transform_2(%arg0: i32) -> (i32, i32) {
    %c0_i32 = arith.constant 0 : i32
    %c0_i32_0 = arith.constant 0 : i32
    %c0_i32_1 = arith.constant 0 : i32
    return %c0_i32, %c0_i32_0 : i32, i32
  }
  func.func @transform_3(%arg0: i32) -> (i32, i32) {
    %c0_i32 = arith.constant 0 : i32
    %c0_i32_0 = arith.constant 0 : i32
    %c0_i32_1 = arith.constant 0 : i32
    return %c0_i32, %c0_i32_0 : i32, i32
  }
  func.func @transform_4(%arg0: i32) -> (i32, i32) {
    %c0_i32 = arith.constant 0 : i32
    %c0_i32_0 = arith.constant 0 : i32
    %c0_i32_1 = arith.constant 0 : i32
    return %c0_i32, %c0_i32_0 : i32, i32
  }
  func.func @transform_5(%arg0: i32) -> (i32, i32) {
    %c0_i32 = arith.constant 0 : i32
    %c0_i32_0 = arith.constant 0 : i32
    %c0_i32_1 = arith.constant 0 : i32
    return %c0_i32, %c0_i32_0 : i32, i32
  }
  func.func @transform_6(%arg0: i32) -> (i32, i32) {
    %c0_i32 = arith.constant 0 : i32
    %c0_i32_0 = arith.constant 0 : i32
    %c0_i32_1 = arith.constant 0 : i32
    return %c0_i32, %c0_i32_0 : i32, i32
  }
  func.func @transform_7(%arg0: i32) -> (i32, i32) {
    %c0_i32 = arith.constant 0 : i32
    %c0_i32_0 = arith.constant 0 : i32
    %c0_i32_1 = arith.constant 0 : i32
    return %c0_i32, %c0_i32_0 : i32, i32
  }
}

</mosaic_0001>

<bundles_post_ra>
// kernel: tpu_custom_call.1
= control target key start
LH: loop header
LB: loop body
LE: loop exit
PB: predicated region body
PF: predicated region fallthrough
CT: control target
= control target key end

     0   :  { %12 = vsyncpa [#allocation3], 0  ;;  %s2028_s0 = inlined_call_operand.hbm [shape: s8[128,128], index: 0, kind: input, shape index: {}]   ;;  %s2029_s1 = inlined_call_operand.vmem [shape: f32[128,1], index: 1, kind: input, shape index: {}]   ;;  %s2030_s2 = inlined_call_operand.vmem [shape: bf16[128,128], index: 2, kind: input, shape index: {}]   ;;  %s2031_s3 = inlined_call_operand.vmem [shape: bf16[128,128], index: 3, kind: input, shape index: {}]   ;;  %s2032_s4 = inlined_call_operand.vmem [shape: f32[1,128], index: 4, kind: input, shape index: {}]   ;;  %s2033_s5 = inlined_call_operand.hbm [shape: bf16[128,128], index: 5, kind: input, shape index: {}]   ;;  %s2034_s6 = inlined_call_operand.vmem [shape: f32[1,128], index: 6, kind: input, shape index: {}]   ;;  %s2035_s7 = inlined_call_operand.hbm [shape: f32[128,128], index: 7, kind: output, shape index: {}]  }
   0x1   :  { %13 = vsyncpa [#allocation6], 0 }
   0x2   :  { %14 = vsyncpa [#allocation4], 0  ;;  %s1505_s24 = smov [#allocation2]  }
   0x3   :  { %s20_s25 = sshll.u32 %s1505_s24, 4  ;;  %s21_s25 = int_to_ptr.vmem [resolvable:$true] %s20_s25 }
   0x4   :  { %s1447_s26 = scalar_lea.vmem %s21_s25, 512  ;;  %p1452_p1 = scmp.lt.s32.totalorder %s21_s25, %s21_s25 }
   0x5   :  { %p1448_p0 = scmp.ne.s32.totalorder %s21_s25, %s1447_s26  ;;  %p1453_p2 = scmp.lt.s32.totalorder %s1447_s26, %s1447_s26 }
   0x7   :  { %p1454_p3 = por %p1453_p2, %p1452_p1 }
   0x9   :  { %p1455_p4 = pnand %p1454_p3, %p1448_p0 }
   0xb   :  { %1458 = shalt.err (!%p1455_p4)
}
   0xc   :  { %s1506_s27 = smov 128   ;;  %s1507_s28 = smov 8  }
   0xd   :  { %26 = dma.hbm_to_vmem [thread:$0]  %s2028_s0, 512, %s21_s25, [#allocation3], %s1506_s27, %s1506_s27, %s1507_s28  }
   0xe   :  { %s1508_s8 = smov [#allocation5]  }
   0xf   :  { %s40_s9 = sshll.u32 %s1508_s8, 4  ;;  %s41_s9 = int_to_ptr.vmem [resolvable:$true] %s40_s9 }
  0x10   :  { %s1467_s10 = scalar_lea.vmem %s41_s9, 1024  ;;  %p1472_p6 = scmp.lt.s32.totalorder %s41_s9, %s41_s9 }
  0x11   :  { %p1468_p5 = scmp.ne.s32.totalorder %s41_s9, %s1467_s10  ;;  %p1473_p7 = scmp.lt.s32.totalorder %s1467_s10, %s1467_s10 }
  0x13   :  { %p1474_p8 = por %p1473_p7, %p1472_p6 }
  0x15   :  { %p1475_p9 = pnand %p1474_p8, %p1468_p5 }
  0x17   :  { %1478 = shalt.err (!%p1475_p9)
}
  0x18   :  { %s1509_s11 = smov 64   ;;  %s1510_s12 = smov 4  }
  0x19   :  { %46 = dma.hbm_to_vmem [thread:$0]  %s2033_s5, 1024, %s41_s9, [#allocation6], %s1509_s11, %s1509_s11, %s1510_s12  }
  0x1a   :  { %1499 = dma.done.wait [#allocation3], 512  }
  0x1b   :  { %1500 = vsyncadd [#allocation3], 4294966784 }
  0x1c   :  { %1501 = dma.done.wait [#allocation6], 1024  }
  0x1d   :  { %1502 = vsyncadd [#allocation6], 4294966272  ;;  %v1511_v0 = vmov 0   ;;  %v1351_v1 = vld [vmem:[%s2031_s3 + $0x38] sm:$0xff]   ;;  %v1352_v2 = vld [vmem:[%s2031_s3 + $0x30] sm:$0xff]  }
  0x1e   :  { %1349 = vset.pattern.permute.xlu0 %v1511_v0  ;;  %1350 = vset.pattern.permute.xlu1 %v1511_v0  ;;  %v1353_v3 = vld [vmem:[%s2031_s3 + $0x28] sm:$0xff]   ;;  %v1354_v4 = vld [vmem:[%s2031_s3 + $0x20] sm:$0xff]   ;;  %v1355_v6 = vld [vmem:[%s2031_s3 + $0x18] sm:$0xff]  }
  0x1f   :  { %1213 = vmatprep.subr.bf16.mxu0 %v1351_v1  ;;  %v1359_v5 = vld [vmem:[%s2030_s2] sm:$0xff]   ;;  %v1356_v7 = vld [vmem:[%s2031_s3 + $0x10] sm:$0xff]   ;;  %v71_v10 = vld [vmem:[%s2029_s1 + $0x78] sm:$0xff] }
  0x20   :  { %1214 = vmatpush3.bf16.msra.mxu0 %v1351_v1  ;;  %1229 = vmatprep.mubr.bf16.mxu0 %v1359_v5  ;;  %v70_v8 = vld [vmem:[%s2029_s1 + $0x70] sm:$0xff]  ;;  %v68_v9 = vld [vmem:[%s2029_s1 + $0x60] sm:$0xff]  ;;  %v69_v11 = vld [vmem:[%s2029_s1 + $0x68] sm:$0xff] }
  0x21   :  { %1215 = vmatprep.subr.bf16.mxu0 %v1352_v2  ;;  %381 = vperm.xlu0 %1349, %v70_v8   ;;  %v1357_v12 = vld [vmem:[%s2031_s3 + $0x8] sm:$0xff]   ;;  %v66_v13 = vld [vmem:[%s2029_s1 + $0x50] sm:$0xff]  ;;  %v67_v14 = vld [vmem:[%s2029_s1 + $0x58] sm:$0xff] }
  0x22   :  { %371 = vperm.xlu1 %1350, %v68_v9   ;;  %v1358_v15 = vld [vmem:[%s2031_s3] sm:$0xff]   ;;  %v65_v17 = vld [vmem:[%s2029_s1 + $0x48] sm:$0xff]  ;;  %v62_v19 = vld [vmem:[%s2029_s1 + $0x30] sm:$0xff] }
  0x23   :  { %v64_v16 = vld [vmem:[%s2029_s1 + $0x40] sm:$0xff]  ;;  %v1360_v18 = vld [vmem:[%s2030_s2 + $0x8] sm:$0xff]   ;;  %v63_v20 = vld [vmem:[%s2029_s1 + $0x38] sm:$0xff] }
  0x24   :  { %1216 = vmatpush3.bf16.msra.mxu0 %v1352_v2  ;;  %v1361_v21 = vld [vmem:[%s2030_s2 + $0x10] sm:$0xff]   ;;  %v60_v22 = vld [vmem:[%s2029_s1 + $0x20] sm:$0xff]  ;;  %v61_v23 = vld [vmem:[%s2029_s1 + $0x28] sm:$0xff] }
  0x25   :  { %1217 = vmatprep.subr.bf16.mxu0 %v1353_v3  ;;  %386 = vperm.xlu0 %1349, %v71_v10   ;;  %v1362_v24 = vld [vmem:[%s2030_s2 + $0x18] sm:$0xff]   ;;  %v58_v25 = vld [vmem:[%s2029_s1 + $0x10] sm:$0xff]  ;;  %v1363_v27 = vld [vmem:[%s2030_s2 + $0x20] sm:$0xff]  }
  0x26   :  { %376 = vperm.xlu1 %1350, %v69_v11   ;;  %v59_v26 = vld [vmem:[%s2029_s1 + $0x18] sm:$0xff]  ;;  %v56_v28 = vld [vmem:[%s2029_s1] sm:$0xff]  ;;  %v57_v29 = vld [vmem:[%s2029_s1 + $0x8] sm:$0xff] }
  0x27   :  { %v1364_v30 = vld [vmem:[%s2030_s2 + $0x28] sm:$0xff]   ;;  %v1365_v31 = vld [vmem:[%s2030_s2 + $0x30] sm:$0xff]   ;;  %v1366_v32 = vld [vmem:[%s2030_s2 + $0x38] sm:$0xff]  }
  0x28   :  { %1218 = vmatpush3.bf16.msra.mxu0 %v1353_v3  ;;  %v1658_v33 = vld [vmem:[#allocation2] sm:$0xff]  ;;  %v1367_v35 = vld [vmem:[#allocation5 + $0x38] sm:$0xff]   ;;  %v1368_v36 = vld [vmem:[#allocation5 + $0x30] sm:$0xff]  }
  0x29   :  { %1219 = vmatprep.subr.bf16.mxu0 %v1354_v4  ;;  %361 = vperm.xlu0 %1349, %v66_v13   ;;  %v76_v34 = vunpack.c.l.s8.bf16 %v1658_v33  ;;  %v1369_v37 = vld [vmem:[#allocation5 + $0x28] sm:$0xff]   ;;  %v1370_v38 = vld [vmem:[#allocation5 + $0x20] sm:$0xff]  }
  0x2a   :  { %366 = vperm.xlu1 %1350, %v67_v14  }
  0x2b   :  { %1261 = vmatprep.mubr.bf16.mxu1 %v76_v34 }
  0x2c   :  { %1220 = vmatpush3.bf16.msra.mxu0 %v1354_v4 }
  0x2d   :  { %1221 = vmatprep.subr.bf16.mxu0 %v1355_v6  ;;  %351 = vperm.xlu0 %1349, %v64_v16  }
  0x2e   :  { %356 = vperm.xlu1 %1350, %v65_v17  }
  0x30   :  { %1222 = vmatpush3.bf16.msra.mxu0 %v1355_v6 }
  0x31   :  { %1223 = vmatprep.subr.bf16.mxu0 %v1356_v7  ;;  %341 = vperm.xlu0 %1349, %v62_v19  }
  0x32   :  { %346 = vperm.xlu1 %1350, %v63_v20  }
  0x34   :  { %1224 = vmatpush3.bf16.msra.mxu0 %v1356_v7 }
  0x35   :  { %1225 = vmatprep.subr.bf16.mxu0 %v1357_v12  ;;  %331 = vperm.xlu0 %1349, %v60_v22  }
  0x36   :  { %336 = vperm.xlu1 %1350, %v61_v23  }
  0x38   :  { %1226 = vmatpush3.bf16.msra.mxu0 %v1357_v12 }
  0x39   :  { %1227 = vmatprep.subr.bf16.mxu0 %v1358_v15  ;;  %321 = vperm.xlu0 %1349, %v58_v25  }
  0x3a   :  { %326 = vperm.xlu1 %1350, %v59_v26  }
  0x3c   :  { %1228 = vmatpush3.bf16.msra.mxu0 %v1358_v15 }
  0x3d   :  { %311 = vperm.xlu0 %1349, %v56_v28   ;;  %1277 = vmatprep.subr.bf16.mxu0 %v1367_v35 }
  0x3e   :  { %316 = vperm.xlu1 %1350, %v57_v29  }
  0x3f   :  { %1230 = vmatmul.mubr.bf16.vlgmr.msra.gmra.mxu0 %v1360_v18 }
  0x40   :  { %1233 = vmatprep.mubr.bf16.mxu0 %v1361_v21  ;;  %1278 = vmatpush3.bf16.msra.mxu0 %v1367_v35 }
  0x41   :  { %1279 = vmatprep.subr.bf16.mxu0 %v1368_v36 }
  0x44   :  { %1280 = vmatpush3.bf16.msra.mxu0 %v1368_v36  ;;  %v1722_v36 = vld [vmem:[#allocation2 + $0x10] sm:$0xff] }
  0x45   :  { %1281 = vmatprep.subr.bf16.mxu0 %v1369_v37 }
  0x47   :  { %1234 = vmatmul.mubr.bf16.gmra.mxu0 %v1362_v24 }
  0x48   :  { %1237 = vmatprep.mubr.bf16.mxu0 %v1363_v27  ;;  %1282 = vmatpush3.bf16.msra.mxu0 %v1369_v37 }
  0x49   :  { %1283 = vmatprep.subr.bf16.mxu0 %v1370_v38 }
  0x4c   :  { %1284 = vmatpush3.bf16.msra.mxu0 %v1370_v38  ;;  %v80_v38 = vunpack.c.l.s8.bf16 %v1722_v36 }
  0x4f   :  { %1238 = vmatmul.mubr.bf16.gmra.mxu0 %v1364_v30 }
  0x50   :  { %1241 = vmatprep.mubr.bf16.mxu0 %v1365_v31  ;;  %v1714_v31 = vld [vmem:[#allocation2 + $0x8] sm:$0xff] }
  0x51   :  { %v78_v35 = vunpack.c.l.s8.bf16 %v1714_v31  ;;  %v79_v37 = vunpack.c.h.s8.bf16 %v1714_v31  ;;  %v1815_v31 = vld [vmem:[%s2034_s6] ss:$0 sm:$0xff]  ;;  %s1512_s6 = smov [#allocation7]  }
  0x52   :  { %s1110_s9 = sshll.u32 %s1512_s6, 4  ;;  %s1111_s9 = int_to_ptr.vmem [resolvable:$true] %s1110_s9 }
  0x53   :  { %s1479_s10 = scalar_lea.vmem %s1111_s9, 2048  ;;  %p1484_p11 = scmp.lt.s32.totalorder %s1111_s9, %s1111_s9 }
  0x54   :  { %p1480_p10 = scmp.ne.s32.totalorder %s1111_s9, %s1479_s10  ;;  %p1485_p12 = scmp.lt.s32.totalorder %s1479_s10, %s1479_s10 }
  0x56   :  { %p1486_p13 = por %p1485_p12, %p1484_p11 }
  0x57   :  { %1242 = vmatmul.mubr.bf16.gmra.mxu0 %v1366_v32  ;;  %v77_v32 = vunpack.c.h.s8.bf16 %v1658_v33  ;;  %v894_v33 = vlaneseq }
  0x58   :  { %p1487_p0 = pnand %p1486_p13, %p1480_p10 }
  0x9c   :  { %v1667_v45 = vpop.permute.xlu0 %381 }
  0x9d   :  { %v1665_v43 = vpop.permute.xlu1 %371 }
  0xa0   :  { %v1671_v50 = vpop.permute.xlu0 %386 }
  0xa1   :  { %v1669_v48 = vpop.permute.xlu1 %376 }
  0xa4   :  { %v1675_v55 = vpop.permute.xlu0 %361 }
  0xa5   :  { %v1673_v53 = vpop.permute.xlu1 %366 }
  0xa8   :  { %v1679_v60 = vpop.permute.xlu0 %351 }
  0xa9   :  { %v1677_v58 = vpop.permute.xlu1 %356 }
  0xac   :  { %v1688_v7 = vpop.permute.xlu0 %341 }
  0xad   :  { %v1685_v4 = vpop.permute.xlu1 %346 }
  0xb0   :  { %v1695_v13 = vpop.permute.xlu0 %331 }
  0xb1   :  { %v1692_v11 = vpop.permute.xlu1 %336 }
  0xb4   :  { %v1702_v20 = vpop.permute.xlu0 %321 }
  0xb5   :  { %v1699_v17 = vpop.permute.xlu1 %326 }
  0xb8   :  { %v1709_v26 = vpop.permute.xlu0 %311 }
  0xb9   :  { %v1706_v24 = vpop.permute.xlu1 %316 }
  0xff   :  { %v1231_v39 = vpop.f32.mrf.mxu0 }
 0x100   :  { %v391_v25 = vmul.f32 %v1231_v39, %v1702_v20  ;;  %v1730_v39 = vld [vmem:[#allocation2 + $0x18] sm:$0xff] }
 0x101   :  { %v1663_v40 = vpop.f32.mrf.mxu0 }
 0x102   :  { %v389_v29 = vmul.f32 %v1709_v26, %v1663_v40  ;;  %v81_v40 = vunpack.c.h.s8.bf16 %v1722_v36 }
 0x103   :  { %v1232_v41 = vpop.f32.mrf.mxu0 }
 0x104   :  { %v392_v22 = vmul.f32 %v1232_v41, %v1699_v17  ;;  %v82_v41 = vunpack.c.l.s8.bf16 %v1730_v39 }
 0x105   :  { %v249_v42 = vpop.f32.mrf.mxu0 }
 0x106   :  { %v406_v27 = vpack.c.bf16 %v392_v22, %v391_v25  ;;  %v390_v28 = vmul.f32 %v1706_v24, %v249_v42  ;;  %v83_v42 = vunpack.c.h.s8.bf16 %v1730_v39 }
 0x107   :  { %v1235_v44 = vpop.f32.mrf.mxu0 }
 0x108   :  { %v395_v16 = vmul.f32 %v1235_v44, %v1688_v7  ;;  %v405_v30 = vpack.c.bf16 %v390_v28, %v389_v29  ;;  %v1371_v44 = vld [vmem:[#allocation5 + $0x18] sm:$0xff]  }
 0x109   :  { %v262_v46 = vpop.f32.mrf.mxu0  ;;  %1285 = vmatprep.subr.bf16.mxu0 %v1371_v44 }
 0x10a   :  { %v393_v21 = vmul.f32 %v1695_v13, %v262_v46  ;;  %1286 = vmatpush3.bf16.msra.mxu0 %v1371_v44  ;;  %v1372_v46 = vld [vmem:[#allocation5 + $0x10] sm:$0xff]  }
 0x10b   :  { %v1236_v47 = vpop.f32.mrf.mxu0  ;;  %1287 = vmatprep.subr.bf16.mxu0 %v1372_v46 }
 0x10c   :  { %v396_v14 = vmul.f32 %v1236_v47, %v1685_v4  ;;  %v1373_v47 = vld [vmem:[#allocation5 + $0x8] sm:$0xff]  }
 0x10d   :  { %v265_v49 = vpop.f32.mrf.mxu0 }
 0x10e   :  { %v408_v18 = vpack.c.bf16 %v396_v14, %v395_v16  ;;  %v394_v19 = vmul.f32 %v1692_v11, %v265_v49  ;;  %1288 = vmatpush3.bf16.msra.mxu0 %v1372_v46  ;;  %v1374_v49 = vld [vmem:[#allocation5] sm:$0xff]  }
 0x10f   :  { %v1239_v51 = vpop.f32.mrf.mxu0  ;;  %1289 = vmatprep.subr.bf16.mxu0 %v1373_v47 }
 0x110   :  { %v399_v8 = vmul.f32 %v1239_v51, %v1675_v55  ;;  %v407_v23 = vpack.c.bf16 %v394_v19, %v393_v21 }
 0x111   :  { %v278_v52 = vpop.f32.mrf.mxu0 }
 0x112   :  { %v397_v12 = vmul.f32 %v1679_v60, %v278_v52  ;;  %1290 = vmatpush3.bf16.msra.mxu0 %v1373_v47 }
 0x113   :  { %v1240_v54 = vpop.f32.mrf.mxu0  ;;  %1291 = vmatprep.subr.bf16.mxu0 %v1374_v49 }
 0x114   :  { %v400_v5 = vmul.f32 %v1240_v54, %v1673_v53 }
 0x115   :  { %v281_v56 = vpop.f32.mrf.mxu0 }
 0x116   :  { %v410_v9 = vpack.c.bf16 %v400_v5, %v399_v8  ;;  %v398_v10 = vmul.f32 %v1677_v58, %v281_v56  ;;  %1292 = vmatpush3.bf16.msra.mxu0 %v1374_v49 }
 0x117   :  { %v1243_v57 = vpop.f32.mrf.mxu0 }
 0x118   :  { %v403_v62 = vmul.f32 %v1243_v57, %v1667_v45  ;;  %v409_v15 = vpack.c.bf16 %v398_v10, %v397_v12 }
 0x119   :  { %v294_v59 = vpop.f32.mrf.mxu0 }
 0x11a   :  { %v401_v1 = vmul.f32 %v1665_v43, %v294_v59 }
 0x11b   :  { %v1244_v61 = vpop.f32.mrf.mxu0 }
 0x11c   :  { %v404_v63 = vmul.f32 %v1244_v61, %v1671_v50 }
 0x11d   :  { %v297_v0 = vpop.f32.mrf.mxu0 }
 0x11e   :  { %v402_v2 = vmul.f32 %v1669_v48, %v297_v0  ;;  %v412_v3 = vpack.c.bf16 %v404_v63, %v403_v62 }
 0x120   :  { %v411_v6 = vpack.c.bf16 %v402_v2, %v401_v1  ;;  %1245 = vmatprep.subr.bf16.mxu1 %v412_v3 }
 0x121   :  { %1246 = vmatpush3.bf16.msra.mxu1 %v412_v3 }
 0x122   :  { %1247 = vmatprep.subr.bf16.mxu1 %v411_v6 }
 0x125   :  { %1248 = vmatpush3.bf16.msra.mxu1 %v411_v6 }
 0x126   :  { %1249 = vmatprep.subr.bf16.mxu1 %v410_v9 }
 0x129   :  { %1250 = vmatpush3.bf16.msra.mxu1 %v410_v9 }
 0x12a   :  { %1251 = vmatprep.subr.bf16.mxu1 %v409_v15 }
 0x12d   :  { %1252 = vmatpush3.bf16.msra.mxu1 %v409_v15 }
 0x12e   :  { %1253 = vmatprep.subr.bf16.mxu1 %v408_v18 }
 0x131   :  { %1254 = vmatpush3.bf16.msra.mxu1 %v408_v18 }
 0x132   :  { %1255 = vmatprep.subr.bf16.mxu1 %v407_v23 }
 0x135   :  { %1256 = vmatpush3.bf16.msra.mxu1 %v407_v23 }
 0x136   :  { %1257 = vmatprep.subr.bf16.mxu1 %v406_v27 }
 0x139   :  { %1258 = vmatpush3.bf16.msra.mxu1 %v406_v27 }
 0x13a   :  { %1259 = vmatprep.subr.bf16.mxu1 %v405_v30 }
 0x13d   :  { %1260 = vmatpush3.bf16.msra.mxu1 %v405_v30 }
 0x140   :  { %1262 = vmatmul.mubr.bf16.vlgmr.msra.gmra.mxu1 %v77_v32 }
 0x141   :  { %1265 = vmatprep.mubr.bf16.mxu1 %v78_v35 }
 0x148   :  { %1266 = vmatmul.mubr.bf16.gmra.mxu1 %v79_v37 }
 0x149   :  { %1269 = vmatprep.mubr.bf16.mxu1 %v80_v38 }
 0x150   :  { %1270 = vmatmul.mubr.bf16.gmra.mxu1 %v81_v40 }
 0x151   :  { %1273 = vmatprep.mubr.bf16.mxu1 %v82_v41 }
 0x158   :  { %1274 = vmatmul.mubr.bf16.gmra.mxu1 %v83_v42 }
 0x159   :  { %1325 = vmatprep.mubr.bf16.mxu1 %v76_v34  ;;  %v1748_v34 = vld [vmem:[%s2032_s4] ss:$0 sm:$0xff] }
 0x200   :  { %v1263_v51 = vpop.f32.mrf.mxu1 }
 0x201   :  { %v512_v56 = vmul.f32 %v1263_v51, %v1702_v20 }
 0x202   :  { %v447_v52 = vpop.f32.mrf.mxu1 }
 0x203   :  { %v510_v54 = vmul.f32 %v447_v52, %v1709_v26  ;;  %v535_v1 = vadd.f32 %v1748_v34, %v512_v56 }
 0x204   :  { %v1264_v57 = vpop.f32.mrf.mxu1 }
 0x205   :  { %v513_v59 = vmul.f32 %v1264_v57, %v1699_v17  ;;  %v533_v62 = vadd.f32 %v1748_v34, %v510_v54  ;;  %v551_v12 = vmax.f32 %v535_v1, 0.0 }
 0x206   :  { %v450_v61 = vpop.f32.mrf.mxu1 }
 0x207   :  { %v536_v63 = vadd.f32 %v1748_v34, %v513_v59  ;;  %v511_v0 = vmul.f32 %v450_v61, %v1706_v24  ;;  %v549_v8 = vmax.f32 %v533_v62, 0.0 }
 0x208   :  { %v1267_v2 = vpop.f32.mrf.mxu1 }
 0x209   :  { %v534_v3 = vadd.f32 %v1748_v34, %v511_v0  ;;  %v552_v5 = vmax.f32 %v536_v63, 0.0  ;;  %v516_v14 = vmul.f32 %v1267_v2, %v1688_v7 }
 0x20a   :  { %v463_v6 = vpop.f32.mrf.mxu1 }
 0x20b   :  { %v550_v9 = vmax.f32 %v534_v3, 0.0  ;;  %v514_v10 = vmul.f32 %v463_v6, %v1695_v13  ;;  %v566_v19 = vpack.c.bf16 %v552_v5, %v551_v12  ;;  %v539_v27 = vadd.f32 %v1748_v34, %v516_v14 }
 0x20c   :  { %v1268_v15 = vpop.f32.mrf.mxu1 }
 0x20d   :  { %v517_v16 = vmul.f32 %v1268_v15, %v1685_v4  ;;  %v565_v18 = vpack.c.bf16 %v550_v9, %v549_v8  ;;  %v537_v22 = vadd.f32 %v1748_v34, %v514_v10  ;;  %v555_v51 = vmax.f32 %v539_v27, 0.0 }
 0x20e   :  { %v466_v21 = vpop.f32.mrf.mxu1 }
 0x20f   :  { %v540_v23 = vadd.f32 %v1748_v34, %v517_v16  ;;  %v515_v25 = vmul.f32 %v466_v21, %v1692_v11  ;;  %1293 = vmatprep.mubr.bf16.mxu0 %v565_v18  ;;  %v553_v46 = vmax.f32 %v537_v22, 0.0 }
 0x210   :  { %v1271_v28 = vpop.f32.mrf.mxu1  ;;  %1294 = vmatmul.mubr.bf16.vlgmr.msra.gmra.mxu0 %v566_v19 }
 0x211   :  { %v538_v29 = vadd.f32 %v1748_v34, %v515_v25  ;;  %v556_v30 = vmax.f32 %v540_v23, 0.0  ;;  %v520_v52 = vmul.f32 %v1271_v28, %v1675_v55 }
 0x212   :  { %v479_v44 = vpop.f32.mrf.mxu1 }
 0x213   :  { %v554_v47 = vmax.f32 %v538_v29, 0.0  ;;  %v518_v49 = vmul.f32 %v479_v44, %v1679_v60  ;;  %v568_v61 = vpack.c.bf16 %v556_v30, %v555_v51  ;;  %v543_v1 = vadd.f32 %v1748_v34, %v520_v52 }
 0x214   :  { %v1272_v54 = vpop.f32.mrf.mxu1 }
 0x215   :  { %v521_v56 = vmul.f32 %v1272_v54, %v1673_v53  ;;  %v567_v57 = vpack.c.bf16 %v554_v47, %v553_v46  ;;  %v541_v62 = vadd.f32 %v1748_v34, %v518_v49  ;;  %v559_v12 = vmax.f32 %v543_v1, 0.0 }
 0x216   :  { %v482_v59 = vpop.f32.mrf.mxu1 }
 0x217   :  { %v544_v63 = vadd.f32 %v1748_v34, %v521_v56  ;;  %v519_v0 = vmul.f32 %v482_v59, %v1677_v58  ;;  %1297 = vmatprep.mubr.bf16.mxu0 %v567_v57  ;;  %v557_v8 = vmax.f32 %v541_v62, 0.0 }
 0x218   :  { %v1275_v2 = vpop.f32.mrf.mxu1  ;;  %1298 = vmatmul.mubr.bf16.gmra.mxu0 %v568_v61 }
 0x219   :  { %v542_v3 = vadd.f32 %v1748_v34, %v519_v0  ;;  %v560_v5 = vmax.f32 %v544_v63, 0.0  ;;  %v524_v14 = vmul.f32 %v1275_v2, %v1667_v45 }
 0x21a   :  { %v495_v6 = vpop.f32.mrf.mxu1 }
 0x21b   :  { %v558_v9 = vmax.f32 %v542_v3, 0.0  ;;  %v522_v10 = vmul.f32 %v495_v6, %v1665_v43  ;;  %v570_v21 = vpack.c.bf16 %v560_v5, %v559_v12  ;;  %v547_v27 = vadd.f32 %v1748_v34, %v524_v14 }
 0x21c   :  { %v1276_v15 = vpop.f32.mrf.mxu1 }
 0x21d   :  { %v525_v16 = vmul.f32 %v1276_v15, %v1671_v50  ;;  %v569_v18 = vpack.c.bf16 %v558_v9, %v557_v8  ;;  %v545_v22 = vadd.f32 %v1748_v34, %v522_v10  ;;  %v563_v46 = vmax.f32 %v547_v27, 0.0 }
 0x21e   :  { %v498_v19 = vpop.f32.mrf.mxu1 }
 0x21f   :  { %v548_v23 = vadd.f32 %v1748_v34, %v525_v16  ;;  %v523_v25 = vmul.f32 %v498_v19, %v1669_v48  ;;  %1301 = vmatprep.mubr.bf16.mxu0 %v569_v18  ;;  %v561_v30 = vmax.f32 %v545_v22, 0.0 }
 0x220   :  { %1302 = vmatmul.mubr.bf16.gmra.mxu0 %v570_v21 }
 0x221   :  { %v546_v28 = vadd.f32 %v1748_v34, %v523_v25  ;;  %v564_v29 = vmax.f32 %v548_v23, 0.0 }
 0x223   :  { %v562_v44 = vmax.f32 %v546_v28, 0.0  ;;  %v572_v49 = vpack.c.bf16 %v564_v29, %v563_v46 }
 0x225   :  { %v571_v47 = vpack.c.bf16 %v562_v44, %v561_v30 }
 0x227   :  { %1305 = vmatprep.mubr.bf16.mxu0 %v571_v47 }
 0x228   :  { %1306 = vmatmul.mubr.bf16.gmra.mxu0 %v572_v49 }
 0x2d0   :  { %v1295_v51 = vpop.f32.mrf.mxu0 }
 0x2d1   :  { %v736_v47 = vmul.f32 %v1295_v51, %v1702_v20 }
 0x2d2   :  { %v671_v52 = vpop.f32.mrf.mxu0 }
 0x2d4   :  { %v1296_v54 = vpop.f32.mrf.mxu0 }
 0x2d5   :  { %v737_v44 = vmul.f32 %v1296_v54, %v1699_v17 }
 0x2d6   :  { %v674_v56 = vpop.f32.mrf.mxu0 }
 0x2d7   :  { %v751_v49 = vpack.c.bf16 %v737_v44, %v736_v47 }
 0x2d8   :  { %v1299_v57 = vpop.f32.mrf.mxu0 }
 0x2d9   :  { %v740_v27 = vmul.f32 %v1299_v57, %v1688_v7  ;;  %v734_v57 = vmul.f32 %v671_v52, %v1709_v26 }
 0x2da   :  { %v687_v59 = vpop.f32.mrf.mxu0 }
 0x2db   :  { %v738_v30 = vmul.f32 %v687_v59, %v1695_v13 }
 0x2dc   :  { %v1300_v61 = vpop.f32.mrf.mxu0 }
 0x2dd   :  { %v741_v23 = vmul.f32 %v1300_v61, %v1685_v4  ;;  %v735_v61 = vmul.f32 %v674_v56, %v1706_v24 }
 0x2de   :  { %v690_v62 = vpop.f32.mrf.mxu0 }
 0x2df   :  { %v753_v28 = vpack.c.bf16 %v741_v23, %v740_v27  ;;  %v739_v29 = vmul.f32 %v690_v62, %v1692_v11 }
 0x2e0   :  { %v1303_v63 = vpop.f32.mrf.mxu0 }
 0x2e1   :  { %v744_v18 = vmul.f32 %v1303_v63, %v1675_v55  ;;  %v752_v46 = vpack.c.bf16 %v739_v29, %v738_v30  ;;  %v750_v63 = vpack.c.bf16 %v735_v61, %v734_v57 }
 0x2e2   :  { %v703_v0 = vpop.f32.mrf.mxu0 }
 0x2e3   :  { %v742_v22 = vmul.f32 %v703_v0, %v1679_v60 }
 0x2e4   :  { %v1304_v1 = vpop.f32.mrf.mxu0 }
 0x2e5   :  { %v745_v15 = vmul.f32 %v1304_v1, %v1673_v53 }
 0x2e6   :  { %v706_v34 = vpop.f32.mrf.mxu0 }
 0x2e7   :  { %v755_v19 = vpack.c.bf16 %v745_v15, %v744_v18  ;;  %v743_v21 = vmul.f32 %v706_v34, %v1677_v58 }
 0x2e8   :  { %v1307_v2 = vpop.f32.mrf.mxu0 }
 0x2e9   :  { %v748_v6 = vmul.f32 %v1307_v2, %v1667_v45  ;;  %v754_v25 = vpack.c.bf16 %v743_v21, %v742_v22 }
 0x2ea   :  { %v719_v3 = vpop.f32.mrf.mxu0 }
 0x2eb   :  { %v746_v10 = vmul.f32 %v719_v3, %v1665_v43 }
 0x2ec   :  { %v1308_v5 = vpop.f32.mrf.mxu0 }
 0x2ed   :  { %v749_v8 = vmul.f32 %v1308_v5, %v1671_v50 }
 0x2ee   :  { %v722_v9 = vpop.f32.mrf.mxu0 }
 0x2ef   :  { %v757_v12 = vpack.c.bf16 %v749_v8, %v748_v6  ;;  %v747_v14 = vmul.f32 %v722_v9, %v1669_v48 }
 0x2f1   :  { %v756_v16 = vpack.c.bf16 %v747_v14, %v746_v10  ;;  %1309 = vmatprep.subr.bf16.mxu1 %v757_v12 }
 0x2f2   :  { %1310 = vmatpush3.bf16.msra.mxu1 %v757_v12 }
 0x2f3   :  { %1311 = vmatprep.subr.bf16.mxu1 %v756_v16 }
 0x2f6   :  { %1312 = vmatpush3.bf16.msra.mxu1 %v756_v16 }
 0x2f7   :  { %1313 = vmatprep.subr.bf16.mxu1 %v755_v19 }
 0x2fa   :  { %1314 = vmatpush3.bf16.msra.mxu1 %v755_v19 }
 0x2fb   :  { %1315 = vmatprep.subr.bf16.mxu1 %v754_v25 }
 0x2fe   :  { %1316 = vmatpush3.bf16.msra.mxu1 %v754_v25 }
 0x2ff   :  { %1317 = vmatprep.subr.bf16.mxu1 %v753_v28 }
 0x302   :  { %1318 = vmatpush3.bf16.msra.mxu1 %v753_v28 }
 0x303   :  { %1319 = vmatprep.subr.bf16.mxu1 %v752_v46 }
 0x306   :  { %1320 = vmatpush3.bf16.msra.mxu1 %v752_v46 }
 0x307   :  { %1321 = vmatprep.subr.bf16.mxu1 %v751_v49 }
 0x30a   :  { %1322 = vmatpush3.bf16.msra.mxu1 %v751_v49 }
 0x30b   :  { %1323 = vmatprep.subr.bf16.mxu1 %v750_v63 }
 0x30e   :  { %1324 = vmatpush3.bf16.msra.mxu1 %v750_v63 }
 0x311   :  { %1326 = vmatmul.mubr.bf16.vlgmr.msra.gmra.mxu1 %v77_v32  ;;  %v1810_v32 = vand.u32 127, %v894_v33 }
 0x312   :  { %1329 = vmatprep.mubr.bf16.mxu1 %v78_v35 }
 0x313   :  { %vm896_vm0 = vcmp.lt.s32.totalorder %v1810_v32, 2 }
 0x319   :  { %1330 = vmatmul.mubr.bf16.gmra.mxu1 %v79_v37 }
 0x31a   :  { %1333 = vmatprep.mubr.bf16.mxu1 %v80_v38 }
 0x321   :  { %1334 = vmatmul.mubr.bf16.gmra.mxu1 %v81_v40 }
 0x322   :  { %1337 = vmatprep.mubr.bf16.mxu1 %v82_v41 }
 0x329   :  { %1338 = vmatmul.mubr.bf16.gmra.mxu1 %v83_v42 }
 0x3d1   :  { %v1327_v51 = vpop.f32.mrf.mxu1 }
 0x3d2   :  { %v857_v35 = vmul.f32 %v1327_v51, %v1702_v20 }
 0x3d3   :  { %v792_v37 = vpop.f32.mrf.mxu1 }
 0x3d4   :  { %v855_v36 = vmul.f32 %v792_v37, %v1709_v26  ;;  %v880_v38 = vadd.f32 %v1815_v31, %v857_v35 }
 0x3d5   :  { %v1328_v39 = vpop.f32.mrf.mxu1 }
 0x3d6   :  { %v858_v40 = vmul.f32 %v1328_v39, %v1699_v17  ;;  %v1824_v41 = vsel %vm896_vm0, %v880_v38, -inf  ;;  %v878_v42 = vadd.f32 %v1815_v31, %v855_v36 }
 0x3d7   :  { %917 = vmax.xlane.f32.xlu0 %v1824_v41  ;;  %v795_v52 = vpop.f32.mrf.mxu1 }
 0x3d8   :  { %v856_v20 = vmul.f32 %v795_v52, %v1706_v24  ;;  %v1832_v26 = vsel %vm896_vm0, %v878_v42, -inf  ;;  %v881_v59 = vadd.f32 %v1815_v31, %v858_v40 }
 0x3d9   :  { %v1331_v54 = vpop.f32.mrf.mxu1 }
 0x3da   :  { %v861_v56 = vmul.f32 %v1331_v54, %v1688_v7  ;;  %v879_v17 = vadd.f32 %v1815_v31, %v856_v20  ;;  %v1847_v2 = vsel %vm896_vm0, %v881_v59, -inf }
 0x3db   :  { %913 = vmax.xlane.f32.xlu0 %v1832_v26  ;;  %v808_v62 = vpop.f32.mrf.mxu1 }
 0x3dc   :  { %v859_v0 = vmul.f32 %v808_v62, %v1695_v13  ;;  %v1840_v1 = vsel %vm896_vm0, %v879_v17, -inf  ;;  %v884_v24 = vadd.f32 %v1815_v31, %v861_v56 }
 0x3dd   :  { %915 = vmax.xlane.f32.xlu1 %v1840_v1  ;;  %v1332_v7 = vpop.f32.mrf.mxu1 }
 0x3de   :  { %v862_v34 = vmul.f32 %v1332_v7, %v1685_v4  ;;  %v1853_v5 = vsel %vm896_vm0, %v884_v24, -inf  ;;  %v882_v8 = vadd.f32 %v1815_v31, %v859_v0 }
 0x3df   :  { %919 = vmax.xlane.f32.xlu0 %v1847_v2  ;;  %v811_v3 = vpop.f32.mrf.mxu1 }
 0x3e0   :  { %v860_v13 = vmul.f32 %v811_v3, %v1692_v11  ;;  %v885_v6 = vadd.f32 %v1815_v31, %v862_v34  ;;  %v901_v15 = vsel %vm896_vm0, %v882_v8, -inf }
 0x3e1   :  { %925 = vmax.xlane.f32.xlu1 %v1853_v5  ;;  %v1335_v4 = vpop.f32.mrf.mxu1 }
 0x3e2   :  { %v865_v9 = vmul.f32 %v1335_v4, %v1675_v55  ;;  %v1861_v10 = vsel %vm896_vm0, %v885_v6, -inf  ;;  %v883_v12 = vadd.f32 %v1815_v31, %v860_v13 }
 0x3e3   :  { %927 = vmax.xlane.f32.xlu0 %v1861_v10  ;;  %v824_v11 = vpop.f32.mrf.mxu1 }
 0x3e4   :  { %v863_v14 = vmul.f32 %v824_v11, %v1679_v60  ;;  %v888_v16 = vadd.f32 %v1815_v31, %v865_v9  ;;  %v902_v19 = vsel %vm896_vm0, %v883_v12, -inf }
 0x3e5   :  { %921 = vmax.xlane.f32.xlu1 %v901_v15  ;;  %v1336_v18 = vpop.f32.mrf.mxu1 }
 0x3e6   :  { %v866_v55 = vmul.f32 %v1336_v18, %v1673_v53  ;;  %v907_v23 = vsel %vm896_vm0, %v888_v16, -inf  ;;  %v886_v25 = vadd.f32 %v1815_v31, %v863_v14 }
 0x3e7   :  { %923 = vmax.xlane.f32.xlu0 %v902_v19  ;;  %v827_v21 = vpop.f32.mrf.mxu1 }
 0x3e8   :  { %v864_v22 = vmul.f32 %v827_v21, %v1677_v58  ;;  %v889_v60 = vadd.f32 %v1815_v31, %v866_v55  ;;  %v905_v44 = vsel %vm896_vm0, %v886_v25, -inf }
 0x3e9   :  { %933 = vmax.xlane.f32.xlu1 %v907_v23  ;;  %v1339_v27 = vpop.f32.mrf.mxu1 }
 0x3ea   :  { %v1879_v28 = vsel %vm896_vm0, %v889_v60, -inf  ;;  %v887_v53 = vadd.f32 %v1815_v31, %v864_v22  ;;  %v869_v58 = vmul.f32 %v1339_v27, %v1667_v45 }
 0x3eb   :  { %935 = vmax.xlane.f32.xlu0 %v1879_v28  ;;  %v840_v29 = vpop.f32.mrf.mxu1 }
 0x3ec   :  { %v867_v30 = vmul.f32 %v840_v29, %v1665_v43  ;;  %v1889_v47 = vsel %vm896_vm0, %v887_v53, -inf  ;;  %v892_v63 = vadd.f32 %v1815_v31, %v869_v58 }
 0x3ed   :  { %929 = vmax.xlane.f32.xlu1 %v905_v44  ;;  %v1340_v46 = vpop.f32.mrf.mxu1 }
 0x3ee   :  { %v890_v49 = vadd.f32 %v1815_v31, %v867_v30  ;;  %v870_v57 = vmul.f32 %v1340_v46, %v1671_v50  ;;  %v1901_v51 = vsel %vm896_vm0, %v892_v63, -inf }
 0x3ef   :  { %931 = vmax.xlane.f32.xlu0 %v1889_v47  ;;  %v843_v61 = vpop.f32.mrf.mxu1 }
 0x3f0   :  { %v868_v45 = vmul.f32 %v843_v61, %v1669_v48  ;;  %v909_v43 = vsel %vm896_vm0, %v890_v49, -inf  ;;  %v893_v50 = vadd.f32 %v1815_v31, %v870_v57 }
 0x3f1   :  { %937 = vmax.xlane.f32.xlu1 %v909_v43 }
 0x3f2   :  { %v891_v33 = vadd.f32 %v1815_v31, %v868_v45  ;;  %v1912_v48 = vsel %vm896_vm0, %v893_v50, -inf }
 0x3f4   :  { %v1905_v35 = vsel %vm896_vm0, %v891_v33, -inf }
 0x3f5   :  { %941 = vmax.xlane.f32.xlu1 %v1901_v51  ;;  %939 = vmax.xlane.f32.xlu0 %v1905_v35 }
 0x3f9   :  { %943 = vmax.xlane.f32.xlu0 %v1912_v48 }
 0x460   :  { %v918_v37 = vpop.xlane.xlu0 %917 }
 0x461   :  { %v1916_v36 = vsub.f32 %v1824_v41, %v918_v37 }
 0x463   :  { %v965_v38 = vmul.f32 1.442695, %v1916_v36 }
 0x464   :  { %v914_v39 = vpop.xlane.xlu0 %913 }
 0x465   :  { %1375 = vpow2.f32 %v965_v38  ;;  %v1920_v31 = vsub.f32 %v1832_v26, %v914_v39 }
 0x466   :  { %v916_v40 = vpop.xlane.xlu1 %915 }
 0x467   :  { %v961_v42 = vmul.f32 1.442695, %v1920_v31  ;;  %v1924_v20 = vsub.f32 %v1840_v1, %v916_v40 }
 0x468   :  { %v920_v52 = vpop.xlane.xlu0 %919 }
 0x469   :  { %1377 = vpow2.f32 %v961_v42  ;;  %v1927_v54 = vsub.f32 %v1847_v2, %v920_v52  ;;  %v963_v26 = vmul.f32 1.442695, %v1924_v20 }
 0x46a   :  { %v926_v41 = vpop.xlane.xlu1 %925 }
 0x46b   :  { %v967_v56 = vmul.f32 1.442695, %v1927_v54  ;;  %v1931_v17 = vsub.f32 %v1853_v5, %v926_v41 }
 0x46c   :  { %v928_v59 = vpop.xlane.xlu0 %927 }
 0x46d   :  { %1379 = vpow2.f32 %v967_v56  ;;  %v973_v62 = vmul.f32 1.442695, %v1931_v17  ;;  %v1936_v0 = vsub.f32 %v1861_v10, %v928_v59 }
 0x46e   :  { %v922_v1 = vpop.xlane.xlu1 %921 }
 0x46f   :  { %1381 = vpow2.f32 %v973_v62  ;;  %v1938_v24 = vsub.f32 %v901_v15, %v922_v1  ;;  %v975_v34 = vmul.f32 1.442695, %v1936_v0 }
 0x470   :  { %v924_v7 = vpop.xlane.xlu0 %923  ;;  %1383 = vpow2.f32 %v963_v26 }
 0x471   :  { %v969_v2 = vmul.f32 1.442695, %v1938_v24  ;;  %v1942_v3 = vsub.f32 %v902_v19, %v924_v7 }
 0x472   :  { %v1376_v13 = vpop.eup %1375  ;;  %v934_v5 = vpop.xlane.xlu1 %933 }
 0x473   :  { %1385 = vpow2.f32 %v969_v2  ;;  %v1944_v6 = vsub.f32 %v907_v23, %v934_v5  ;;  %997 = vadd.xlane.f32.xlu1 %v1376_v13  ;;  %v971_v4 = vmul.f32 1.442695, %v1942_v3 }
 0x474   :  { %v936_v8 = vpop.xlane.xlu0 %935  ;;  %1387 = vpow2.f32 %v975_v34 }
 0x475   :  { %v981_v9 = vmul.f32 1.442695, %v1944_v6  ;;  %v1949_v10 = vsub.f32 %v1879_v28, %v936_v8 }
 0x476   :  { %v1378_v12 = vpop.eup %1377  ;;  %v930_v11 = vpop.xlane.xlu1 %929 }
 0x477   :  { %1389 = vpow2.f32 %v981_v9  ;;  %v1951_v14 = vsub.f32 %v905_v44, %v930_v11  ;;  %993 = vadd.xlane.f32.xlu1 %v1378_v12  ;;  %v983_v16 = vmul.f32 1.442695, %v1949_v10 }
 0x478   :  { %v932_v15 = vpop.xlane.xlu0 %931  ;;  %1391 = vpow2.f32 %v971_v4 }
 0x479   :  { %v977_v18 = vmul.f32 1.442695, %v1951_v14  ;;  %v1956_v55 = vsub.f32 %v1889_v47, %v932_v15 }
 0x47a   :  { %v1380_v19 = vpop.eup %1379  ;;  %v938_v21 = vpop.xlane.xlu1 %937 }
 0x47b   :  { %1393 = vpow2.f32 %v977_v18  ;;  %v1958_v22 = vsub.f32 %v909_v43, %v938_v21  ;;  %999 = vadd.xlane.f32.xlu0 %v1380_v19  ;;  %v979_v60 = vmul.f32 1.442695, %v1956_v55 }
 0x47c   :  { %v1382_v23 = vpop.eup %1381  ;;  %1395 = vpow2.f32 %v983_v16 }
 0x47d   :  { %v985_v25 = vmul.f32 1.442695, %v1958_v22  ;;  %1005 = vadd.xlane.f32.xlu1 %v1382_v23  ;;  %v1384_v27 = vpop.eup %1383 }
 0x47e   :  { %v942_v28 = vpop.xlane.xlu1 %941  ;;  %v940_v53 = vpop.xlane.xlu0 %939 }
 0x47f   :  { %1397 = vpow2.f32 %v985_v25  ;;  %v1963_v29 = vsub.f32 %v1901_v51, %v942_v28  ;;  %v1966_v58 = vsub.f32 %v1905_v35, %v940_v53  ;;  %995 = vadd.xlane.f32.xlu0 %v1384_v27 }
 0x480   :  { %v1386_v30 = vpop.eup %1385  ;;  %1399 = vpow2.f32 %v979_v60 }
 0x481   :  { %v989_v44 = vmul.f32 1.442695, %v1963_v29  ;;  %v987_v46 = vmul.f32 1.442695, %v1966_v58  ;;  %1001 = vadd.xlane.f32.xlu1 %v1386_v30  ;;  %v1388_v47 = vpop.eup %1387 }
 0x482   :  { %v944_v49 = vpop.xlane.xlu0 %943 }
 0x483   :  { %1401 = vpow2.f32 %v989_v44  ;;  %v1971_v61 = vsub.f32 %v1912_v48, %v944_v49  ;;  %1007 = vadd.xlane.f32.xlu0 %v1388_v47 }
 0x484   :  { %v1390_v57 = vpop.eup %1389  ;;  %1403 = vpow2.f32 %v987_v46 }
 0x485   :  { %v991_v45 = vmul.f32 1.442695, %v1971_v61  ;;  %1013 = vadd.xlane.f32.xlu1 %v1390_v57  ;;  %v1392_v43 = vpop.eup %1391 }
 0x487   :  { %1003 = vadd.xlane.f32.xlu0 %v1392_v43  ;;  %1405 = vpow2.f32 %v991_v45 }
 0x488   :  { %v1394_v63 = vpop.eup %1393 }
 0x489   :  { %1009 = vadd.xlane.f32.xlu1 %v1394_v63  ;;  %v1396_v33 = vpop.eup %1395 }
 0x48b   :  { %1015 = vadd.xlane.f32.xlu0 %v1396_v33 }
 0x48c   :  { %v1398_v51 = vpop.eup %1397 }
 0x48d   :  { %1017 = vadd.xlane.f32.xlu1 %v1398_v51  ;;  %v1400_v35 = vpop.eup %1399 }
 0x48f   :  { %1011 = vadd.xlane.f32.xlu0 %v1400_v35 }
 0x490   :  { %v1402_v50 = vpop.eup %1401 }
 0x491   :  { %1021 = vadd.xlane.f32.xlu1 %v1402_v50  ;;  %v1404_v48 = vpop.eup %1403 }
 0x493   :  { %1019 = vadd.xlane.f32.xlu0 %v1404_v48 }
 0x494   :  { %v1406_v37 = vpop.eup %1405 }
 0x497   :  { %1023 = vadd.xlane.f32.xlu0 %v1406_v37 }
 0x4fc   :  { %v998_v38 = vpop.xlane.xlu1 %997 }
 0x4fd   :  { %1407 = vlog2.f32 %v998_v38 }
 0x500   :  { %v994_v39 = vpop.xlane.xlu1 %993 }
 0x501   :  { %1409 = vlog2.f32 %v994_v39 }
 0x504   :  { %v1000_v40 = vpop.xlane.xlu0 %999 }
 0x505   :  { %1411 = vlog2.f32 %v1000_v40 }
 0x506   :  { %v1006_v42 = vpop.xlane.xlu1 %1005 }
 0x507   :  { %1413 = vlog2.f32 %v1006_v42 }
 0x508   :  { %v996_v52 = vpop.xlane.xlu0 %995 }
 0x509   :  { %1415 = vlog2.f32 %v996_v52 }
 0x50a   :  { %v1408_v41 = vpop.eup %1407  ;;  %v1002_v56 = vpop.xlane.xlu1 %1001 }
 0x50b   :  { %v1030_v59 = vmul.f32 0.6931472, %v1408_v41  ;;  %1417 = vlog2.f32 %v1002_v56 }
 0x50c   :  { %v1008_v26 = vpop.xlane.xlu0 %1007 }
 0x50d   :  { %v1059_v62 = vsub.f32 %v1916_v36, %v1030_v59  ;;  %1419 = vlog2.f32 %v1008_v26 }
 0x50e   :  { %v1410_v1 = vpop.eup %1409  ;;  %v1014_v7 = vpop.xlane.xlu1 %1013 }
 0x50f   :  { %v1075_v34 = vsel %vm896_vm0, %v1059_v62, 0.0  ;;  %v1026_v2 = vmul.f32 0.6931472, %v1410_v1  ;;  %1421 = vlog2.f32 %v1014_v7 }
 0x510   :  { %1091 = vst [vmem:[#allocation7 + $0x10] sm:$0xff] %v1075_v34  ;;  %v1004_v13 = vpop.xlane.xlu0 %1003 }
 0x511   :  { %v1057_v5 = vsub.f32 %v1920_v31, %v1026_v2  ;;  %1423 = vlog2.f32 %v1004_v13 }
 0x512   :  { %v1412_v8 = vpop.eup %1411  ;;  %v1010_v4 = vpop.xlane.xlu1 %1009 }
 0x513   :  { %v1073_v9 = vsel %vm896_vm0, %v1057_v5, 0.0  ;;  %v1032_v12 = vmul.f32 0.6931472, %v1412_v8  ;;  %1425 = vlog2.f32 %v1010_v4 }
 0x514   :  { %v1414_v36 = vpop.eup %1413  ;;  %1089 = vst [vmem:[#allocation7] sm:$0xff] %v1073_v9  ;;  %v1016_v11 = vpop.xlane.xlu0 %1015 }
 0x515   :  { %v1060_v15 = vsub.f32 %v1927_v54, %v1032_v12  ;;  %v1038_v16 = vmul.f32 0.6931472, %v1414_v36  ;;  %1427 = vlog2.f32 %v1016_v11 }
 0x516   :  { %v1416_v18 = vpop.eup %1415  ;;  %v1018_v19 = vpop.xlane.xlu1 %1017 }
 0x517   :  { %v1076_v31 = vsel %vm896_vm0, %v1060_v15, 0.0  ;;  %v1063_v21 = vsub.f32 %v1931_v17, %v1038_v16  ;;  %v1028_v23 = vmul.f32 0.6931472, %v1416_v18  ;;  %1429 = vlog2.f32 %v1018_v19 }
 0x518   :  { %v1418_v60 = vpop.eup %1417  ;;  %1092 = vst [vmem:[#allocation7 + $0x18] sm:$0xff] %v1076_v31  ;;  %v1012_v25 = vpop.xlane.xlu0 %1011 }
 0x519   :  { %v1079_v27 = vsel %vm896_vm0, %v1063_v21, 0.0  ;;  %v1058_v28 = vsub.f32 %v1924_v20, %v1028_v23  ;;  %v1034_v54 = vmul.f32 0.6931472, %v1418_v60  ;;  %1431 = vlog2.f32 %v1012_v25 }
 0x51a   :  { %v1420_v53 = vpop.eup %1419  ;;  %1095 = vst [vmem:[#allocation7 + $0x30] sm:$0xff] %v1079_v27  ;;  %v1022_v30 = vpop.xlane.xlu1 %1021 }
 0x51b   :  { %v1074_v44 = vsel %vm896_vm0, %v1058_v28, 0.0  ;;  %v1061_v17 = vsub.f32 %v1938_v24, %v1034_v54  ;;  %v1040_v46 = vmul.f32 0.6931472, %v1420_v53  ;;  %1433 = vlog2.f32 %v1022_v30 }
 0x51c   :  { %v1422_v47 = vpop.eup %1421  ;;  %1090 = vst [vmem:[#allocation7 + $0x8] sm:$0xff] %v1074_v44  ;;  %v1020_v49 = vpop.xlane.xlu0 %1019 }
 0x51d   :  { %v1077_v57 = vsel %vm896_vm0, %v1061_v17, 0.0  ;;  %v1064_v20 = vsub.f32 %v1936_v0, %v1040_v46  ;;  %v1046_v45 = vmul.f32 0.6931472, %v1422_v47  ;;  %1435 = vlog2.f32 %v1020_v49 }
 0x51e   :  { %v1424_v43 = vpop.eup %1423  ;;  %1093 = vst [vmem:[#allocation7 + $0x20] sm:$0xff] %v1077_v57 }
 0x51f   :  { %v1080_v63 = vsel %vm896_vm0, %v1064_v20, 0.0  ;;  %v1067_v33 = vsub.f32 %v1944_v6, %v1046_v45  ;;  %v1036_v24 = vmul.f32 0.6931472, %v1424_v43 }
 0x520   :  { %v1426_v51 = vpop.eup %1425  ;;  %1096 = vst [vmem:[#allocation7 + $0x38] sm:$0xff] %v1080_v63  ;;  %v1024_v35 = vpop.xlane.xlu0 %1023 }
 0x521   :  { %v1083_v50 = vsel %vm896_vm0, %v1067_v33, 0.0  ;;  %v1062_v48 = vsub.f32 %v1942_v3, %v1036_v24  ;;  %v1042_v37 = vmul.f32 0.6931472, %v1426_v51  ;;  %1437 = vlog2.f32 %v1024_v35 }
 0x522   :  { %v1428_v0 = vpop.eup %1427  ;;  %1099 = vst [vmem:[#allocation7 + $0x50] sm:$0xff] %v1083_v50 }
 0x523   :  { %v1078_v38 = vsel %vm896_vm0, %v1062_v48, 0.0  ;;  %v1065_v39 = vsub.f32 %v1951_v14, %v1042_v37  ;;  %v1048_v40 = vmul.f32 0.6931472, %v1428_v0 }
 0x524   :  { %v1430_v6 = vpop.eup %1429  ;;  %1094 = vst [vmem:[#allocation7 + $0x28] sm:$0xff] %v1078_v38 }
 0x525   :  { %v1081_v42 = vsel %vm896_vm0, %v1065_v39, 0.0  ;;  %v1068_v52 = vsub.f32 %v1949_v10, %v1048_v40  ;;  %v1050_v41 = vmul.f32 0.6931472, %v1430_v6 }
 0x526   :  { %v1432_v56 = vpop.eup %1431  ;;  %1097 = vst [vmem:[#allocation7 + $0x40] sm:$0xff] %v1081_v42 }
 0x527   :  { %v1084_v3 = vsel %vm896_vm0, %v1068_v52, 0.0  ;;  %v1069_v59 = vsub.f32 %v1958_v22, %v1050_v41  ;;  %v1044_v26 = vmul.f32 0.6931472, %v1432_v56 }
 0x528   :  { %v1434_v62 = vpop.eup %1433  ;;  %1100 = vst [vmem:[#allocation7 + $0x58] sm:$0xff] %v1084_v3 }
 0x529   :  { %v1085_v14 = vsel %vm896_vm0, %v1069_v59, 0.0  ;;  %v1066_v1 = vsub.f32 %v1956_v55, %v1044_v26  ;;  %v1054_v7 = vmul.f32 0.6931472, %v1434_v62 }
 0x52a   :  { %v1436_v34 = vpop.eup %1435  ;;  %1101 = vst [vmem:[#allocation7 + $0x60] sm:$0xff] %v1085_v14 }
 0x52b   :  { %v1082_v10 = vsel %vm896_vm0, %v1066_v1, 0.0  ;;  %v1071_v2 = vsub.f32 %v1963_v29, %v1054_v7  ;;  %v1052_v13 = vmul.f32 0.6931472, %v1436_v34 }
 0x52c   :  { %1098 = vst [vmem:[#allocation7 + $0x48] sm:$0xff] %v1082_v10 }
 0x52d   :  { %v1087_v22 = vsel %vm896_vm0, %v1071_v2, 0.0  ;;  %v1070_v5 = vsub.f32 %v1966_v58, %v1052_v13 }
 0x52e   :  { %v1438_v8 = vpop.eup %1437  ;;  %1103 = vst [vmem:[#allocation7 + $0x70] sm:$0xff] %v1087_v22 }
 0x52f   :  { %v1086_v55 = vsel %vm896_vm0, %v1070_v5, 0.0  ;;  %v1056_v4 = vmul.f32 0.6931472, %v1438_v8 }
 0x530   :  { %1102 = vst [vmem:[#allocation7 + $0x68] sm:$0xff] %v1086_v55 }
 0x531   :  { %v1072_v9 = vsub.f32 %v1971_v61, %v1056_v4 }
 0x533   :  { %v1088_v29 = vsel %vm896_vm0, %v1072_v9, 0.0 }
 0x534   :  { %1104 = vst [vmem:[#allocation7 + $0x78] sm:$0xff] %v1088_v29 }
 0x535   :  { %1490 = shalt.err (!%p1487_p0)
}
 0x536   :  { %1116 = dma.vmem_to_hbm [thread:$0]  %s1111_s9, 2048, %s2035_s7, [#allocation4], %s1506_s27, %s1506_s27, %s1507_s28  }
 0x537   :  { %1503 = dma.done.wait [#allocation4], 2048  }
 0x538   :  { %1504 = vsyncadd [#allocation4], 4294965248 }
 0x539   :  { %1120 = vsyncpa [#allocation3], 1 }
 0x53a   :  { %1121 = vsyncpa [#allocation6], 1 }
 0x53b   :  { %1122 = vsyncpa [#allocation4], 1 }

</bundles_post_ra>
